<compile_context>
chip_gen: v5e
topology: v5e:2x2
jax: 0.10.0
libtpu: 0.0.40
codegen_flags: <defaults>
</compile_context>

<pallas_src>
import jax
import jax.numpy as jnp
from jax.experimental import pallas as pl
from jax.experimental.pallas import tpu as pltpu

_LANE = 128  # TPU vreg lane width


def _poly_linear_kernel(xv_ref, sel_ref, b_ref, o_ref):
    # xv_ref : (TR, F*128)  lane-dense view: view-row r, col F*j+f == x[r*128+j, f]
    # sel_ref: (F*128, 128) banded selector (resident across the grid)
    # b_ref  : (1,)         bias scalar in SMEM
    # o_ref  : (TR, 128)    lane-dense output (batch element r*128+j on lane j)
    o_ref[...] = (
        jnp.dot(
            xv_ref[...],
            sel_ref[...],
            preferred_element_type=jnp.float32,
            precision=jax.lax.Precision.HIGHEST,
        )
        + b_ref[0]
    )


def poly_regression_forward(x, weight, bias, *, block_view_rows=2048):
    """y = x @ weight.T + bias  (PolyRegression.forward / nn.Linear(F, 1))."""
    B, F = x.shape
    FW = F * _LANE
    x = x.astype(jnp.float32)
    weight = weight.reshape(1, F).astype(jnp.float32)
    bias = bias.reshape(1).astype(jnp.float32)

    # Lane-dense view of the row-major (B, F) buffer: (R, F*128) with
    # view[r, F*j + f] == x[r*128 + j, f].  Free reshape when B % 128 == 0.
    Bp = ((B + _LANE - 1) // _LANE) * _LANE
    if Bp != B:
        # Bounded pad (< 128 rows) only when the batch is not 128-aligned.
        x = jnp.pad(x, ((0, Bp - B), (0, 0)))
    R = Bp // _LANE
    xv = x.reshape(R, FW)

    # Banded selector: S[F*j + f, j] = w[f]  ->  (xv @ S)[r, j] = sum_f x[b,f]*w[f]
    # for batch element b = r*128 + j.  Built once, DMA'd once (constant index_map).
    sel = jnp.kron(jnp.eye(_LANE, dtype=jnp.float32), weight.reshape(F, 1))

    if R <= block_view_rows:
        tr, grid_r = R, 1            # single block == full extents
    else:
        tr = ((block_view_rows + 7) // 8) * 8   # keep the (8,128) rule
        grid_r = pl.cdiv(R, tr)                 # ragged last block is masked

    cost = pl.CostEstimate(
        flops=2 * R * FW * _LANE,
        transcendentals=0,
        bytes_accessed=R * FW * 4 + FW * _LANE * 4 + R * _LANE * 4,
    )

    out = pl.pallas_call(
        _poly_linear_kernel,
        out_shape=jax.ShapeDtypeStruct((R, _LANE), jnp.float32),
        grid=(grid_r,),
        in_specs=[
            pl.BlockSpec((tr, FW), lambda i: (i, 0)),               # x tile (lane-dense)
            pl.BlockSpec((FW, _LANE), lambda i: (0, 0)),            # selector, resident
            pl.BlockSpec(memory_space=pltpu.MemorySpace.SMEM),      # bias scalar
        ],
        out_specs=pl.BlockSpec((tr, _LANE), lambda i: (i, 0)),      # lane-dense output
        compiler_params=pltpu.CompilerParams(
            dimension_semantics=("parallel",),                      # shard batch across TCs
        ),
        cost_estimate=cost,
    )(xv, sel, bias)

    # Layout plumbing back to the nn.Linear output shape (B, 1) — tiny (B*4 B).
    return out.reshape(Bp)[:B].reshape(B, 1)


if __name__ == "__main__":
    key = jax.random.PRNGKey(0)
    k_x, k_w, k_b = jax.random.split(key, 3)

    batch = 8
    n_features = 4  # polynomial features (e.g. x, x^2, x^3, x^4)

    x = jax.random.normal(k_x, (batch, n_features), dtype=jnp.float32)

    # Mimic nn.Linear's uniform(-1/sqrt(F), 1/sqrt(F)) init, deterministically.
    bound = 1.0 / jnp.sqrt(jnp.float32(n_features))
    weight = jax.random.uniform(k_w, (1, n_features), jnp.float32, -bound, bound)
    bias = jax.random.uniform(k_b, (1,), jnp.float32, -bound, bound)

    y = poly_regression_forward(x, weight, bias)
    jax.block_until_ready(y)

    y_ref = x @ weight.T + bias
    assert y.shape == (batch, 1)
    assert jnp.allclose(y, y_ref, atol=1e-4, rtol=1e-4), "mismatch vs reference (small)"

    # Exercise the tiled path: grid > 1 with a ragged last block (R=20 view-rows,
    # tile of 8 -> 3 grid steps, last one partially valid / masked on writeback).
    xl = jax.random.normal(k_x, (2500, n_features), dtype=jnp.float32)
    yl = poly_regression_forward(xl, weight, bias, block_view_rows=8)
    jax.block_until_ready(yl)
    yl_ref = xl @ weight.T + bias
    assert yl.shape == (2500, 1)
    assert jnp.allclose(yl, yl_ref, atol=1e-4, rtol=1e-4), "mismatch vs reference (tiled)"

    print("KERNEL_OK")
</pallas_src>

<mosaic_0001>
module attributes {stable_mosaic.version = 11 : i64} {
  func.func @_poly_linear_kernel(%arg0: i32, %arg1: memref<1x512xf32, #tpu.memory_space<vmem>>, %arg2: memref<512x128xf32, #tpu.memory_space<vmem>>, %arg3: memref<1xf32, #tpu.memory_space<smem>>, %arg4: memref<1x128xf32, #tpu.memory_space<vmem>>) attributes {dimension_semantics = [#tpu.dimension_semantics<parallel>], iteration_bounds = array<i64: 1>, scalar_prefetch = 0 : i64, scratch_operands = 0 : i64, tpu.core_type = #tpu.core_type<tc>, window_params = [{transform_indices = @transform_0, window_bounds = array<i64: 1, 512>}, {pipeline_mode = #tpu.pipeline_mode<synchronous>, transform_indices = @transform_1, window_bounds = array<i64: 512, 128>}, {transform_indices = @transform_2, window_bounds = array<i64: 1>}, {transform_indices = @transform_3, window_bounds = array<i64: 1, 128>}]} {
    %c0 = arith.constant 0 : index
    %c0_0 = arith.constant 0 : index
    %0 = vector.load %arg1[%c0, %c0_0] : memref<1x512xf32, #tpu.memory_space<vmem>>, vector<1x512xf32>
    %c0_1 = arith.constant 0 : index
    %c0_2 = arith.constant 0 : index
    %1 = vector.load %arg2[%c0_1, %c0_2] : memref<512x128xf32, #tpu.memory_space<vmem>>, vector<512x128xf32>
    %cst = arith.constant dense<0.000000e+00> : vector<1x128xf32>
    %2 = tpu.matmul %0, %1, %cst {dimension_numbers = #tpu.dot_dimension_numbers<[1], [0], [0], [1], [0, 0, 1, 1], [], []>, precision = #tpu.contract_precision<fp32>} : vector<1x512xf32>, vector<512x128xf32>, vector<1x128xf32> -> vector<1x128xf32>
    %c0_3 = arith.constant 0 : index
    %3 = memref.load %arg3[%c0_3] : memref<1xf32, #tpu.memory_space<smem>>
    %4 = vector.broadcast %3 : f32 to vector<1x128xf32>
    %5 = arith.addf %2, %4 : vector<1x128xf32>
    %c0_4 = arith.constant 0 : index
    %c0_5 = arith.constant 0 : index
    %6 = vector.load %arg4[%c0_4, %c0_5] : memref<1x128xf32, #tpu.memory_space<vmem>>, vector<1x128xf32>
    tpu.vector_store %arg4[%c0_4, %c0_5], %5 {strides = array<i32>} : memref<1x128xf32, #tpu.memory_space<vmem>>, vector<1x128xf32>,
    return
  }
  func.func @transform_0(%arg0: i32) -> (i32, i32) {
    %c0_i32 = arith.constant 0 : i32
    %c0_i32_0 = arith.constant 0 : i32
    return %arg0, %c0_i32 : i32, i32
  }
  func.func @transform_1(%arg0: i32) -> (i32, i32) {
    %c0_i32 = arith.constant 0 : i32
    %c0_i32_0 = arith.constant 0 : i32
    %c0_i32_1 = arith.constant 0 : i32
    return %c0_i32, %c0_i32_0 : i32, i32
  }
  func.func @transform_2(%arg0: i32) -> i32 {
    %c0_i32 = arith.constant 0 : i32
    %c0_i32_0 = arith.constant 0 : i32
    return %c0_i32 : i32
  }
  func.func @transform_3(%arg0: i32) -> (i32, i32) {
    %c0_i32 = arith.constant 0 : i32
    %c0_i32_0 = arith.constant 0 : i32
    return %arg0, %c0_i32 : i32, i32
  }
}

</mosaic_0001>

<bundles_post_ra>
// kernel: tpu_custom_call.1
= control target key start
LH: loop header
LB: loop body
LE: loop exit
PB: predicated region body
PF: predicated region fallthrough
CT: control target
= control target key end

     0   :  { %9 = vsyncpa [#allocation4], 0  ;;  %s2647_s0 = inlined_call_operand.hbm [shape: f32[1,512], index: 0, kind: input, shape index: {}]   ;;  %s2648_s1 = inlined_call_operand.hbm [shape: f32[512,128], index: 1, kind: input, shape index: {}]   ;;  %s2649_s2 = inlined_call_operand.<no memory space> [shape: f32[1], index: 2, kind: input, shape index: {}]   ;;  %s2650_s3 = inlined_call_operand.hbm [shape: f32[1,128], index: 3, kind: output, shape index: {}]  }
   0x1   :  { %10 = vsyncpa [#allocation7], 0 }
   0x2   :  { %11 = vsyncpa [#allocation5], 0  ;;  %s17_s14 = sshll.u32 %s2647_s0, 4  ;;  %s1588_s15 = smov [#allocation3]   ;;  %s18_s14 = int_to_ptr.hbm [resolvable:$true] %s17_s14 }
   0x3   :  { %s19_s16 = sshll.u32 %s1588_s15, 4  ;;  %s27_s19 = sshll.u32 %s2648_s1, 4  ;;  %s20_s16 = int_to_ptr.vmem [resolvable:$true] %s19_s16  ;;  %s28_s19 = int_to_ptr.hbm [resolvable:$true] %s27_s19 }
   0x4   :  { %22 = dma.hbm_to_vmem [thread:$0]  %s18_s14, 64, %s20_s16, [#allocation4]  }
   0x5   :  { %s1589_s20 = smov [#allocation6]   ;;  %s1590_s22 = smov 128  }
   0x6   :  { %s29_s21 = sshll.u32 %s1589_s20, 4  ;;  %s1591_s23 = smov 8   ;;  %s30_s21 = int_to_ptr.vmem [resolvable:$true] %s29_s21 }
   0x7   :  { %35 = dma.hbm_to_vmem [thread:$0]  %s28_s19, 8192, %s30_s21, [#allocation7], %s1590_s22, %s1590_s22, %s1591_s23  }
   0x8   :  { %1582 = dma.done.wait [#allocation4], 64  }
   0x9   :  { %1583 = vsyncadd [#allocation4], 4294967232 }
   0xa   :  { %1584 = dma.done.wait [#allocation7], 8192  }
   0xb   :  { %1585 = vsyncadd [#allocation7], 4294959104  ;;  %v62_v0 = vld [vmem:[#allocation6 + $0x78] sm:$0xff]  ;;  %v61_v1 = vld [vmem:[#allocation6 + $0x70] sm:$0xff]  ;;  %s1494_s27 = sshll.u32 %s2650_s3, 4  ;;  %s1495_s27 = int_to_ptr.hbm [resolvable:$true] %s1494_s27 }
   0xc   :  { %v60_v2 = vld [vmem:[#allocation6 + $0x68] sm:$0xff]  ;;  %v1619_v3 = vand.u32 4294901760, %v62_v0  ;;  %v1621_v4 = vand.u32 4294901760, %v61_v1  ;;  %v59_v6 = vld [vmem:[#allocation6 + $0x60] sm:$0xff]  ;;  %v58_v7 = vld [vmem:[#allocation6 + $0x58] sm:$0xff] }
   0xd   :  { %v1623_v5 = vand.u32 4294901760, %v60_v2  ;;  %v57_v8 = vld [vmem:[#allocation6 + $0x50] sm:$0xff]  ;;  %v1625_v9 = vand.u32 4294901760, %v59_v6  ;;  %v1627_v10 = vand.u32 4294901760, %v58_v7  ;;  %v56_v12 = vld [vmem:[#allocation6 + $0x48] sm:$0xff]  ;;  %v55_v13 = vld [vmem:[#allocation6 + $0x40] sm:$0xff] }
   0xe   :  { %v1629_v11 = vand.u32 4294901760, %v57_v8  ;;  %123 = vmatpush.msra.mxu0 %v1619_v3  ;;  %v1633_v14 = vsub.f32 %v62_v0, %v1619_v3  ;;  %v1636_v15 = vsub.f32 %v61_v1, %v1621_v4  ;;  %319 = vmatpush.msra.mxu3 %v1619_v3  ;;  %v1642_v17 = vand.u32 4294901760, %v56_v12  ;;  %v54_v21 = vld [vmem:[#allocation6 + $0x38] sm:$0xff]  ;;  %v53_v26 = vld [vmem:[#allocation6 + $0x30] sm:$0xff]  ;;  %v52_v36 = vld [vmem:[#allocation6 + $0x28] sm:$0xff] }
   0xf   :  { %v1640_v16 = vsub.f32 %v60_v2, %v1623_v5  ;;  %v1645_v18 = vsub.f32 %v59_v6, %v1625_v9  ;;  %v1648_v19 = vsub.f32 %v58_v7, %v1627_v10  ;;  %v1650_v20 = vand.u32 4294901760, %v55_v13  ;;  %v51_v42 = vld [vmem:[#allocation6 + $0x20] sm:$0xff]  ;;  %v50_v48 = vld [vmem:[#allocation6 + $0x18] sm:$0xff]  ;;  %v49_v54 = vld [vmem:[#allocation6 + $0x10] sm:$0xff] }
  0x10   :  { %125 = vmatpush.msra.mxu0 %v1621_v4  ;;  %266 = vmatpush.msra.mxu2 %v1633_v14  ;;  %v165_v22 = vand.u32 4294901760, %v1633_v14  ;;  %v2666_v23 = vand.u32 4294901760, %v1636_v15  ;;  %v1658_v25 = vsub.f32 %v57_v8, %v1629_v11  ;;  %v1664_v29 = vsub.f32 %v56_v12, %v1642_v17  ;;  %v48_v59 = vld [vmem:[#allocation6 + $0x8] sm:$0xff]  ;;  %v78_v60 = vld [vmem:[#allocation6 + $0xf8] sm:$0xff]  ;;  %v77_v2 = vld [vmem:[#allocation6 + $0xf0] sm:$0xff] }
  0x11   :  { %v2664_v24 = vand.u32 4294901760, %v1640_v16  ;;  %321 = vmatpush.msra.mxu3 %v1621_v4  ;;  %v2663_v27 = vand.u32 4294901760, %v1645_v18  ;;  %v2660_v28 = vand.u32 4294901760, %v1648_v19  ;;  %v1677_v33 = vand.u32 4294901760, %v54_v21  ;;  %v47_v7 = vld [vmem:[#allocation6] sm:$0xff] }
  0x12   :  { %127 = vmatpush.msra.mxu0 %v1623_v5  ;;  %269 = vmatpush.msra.mxu2 %v1636_v15  ;;  %v166_v30 = vsub.f32 %v1633_v14, %v165_v22  ;;  %v172_v31 = vsub.f32 %v1636_v15, %v2666_v23  ;;  %v1680_v34 = vand.u32 4294901760, %v53_v26  ;;  %v1683_v35 = vsub.f32 %v55_v13, %v1650_v20  ;;  %v69_v23 = vld [vmem:[#allocation6 + $0xb0] sm:$0xff]  ;;  %v68_v14 = vld [vmem:[#allocation6 + $0xa8] sm:$0xff] }
  0x13   :  { %v178_v32 = vsub.f32 %v1640_v16, %v2664_v24  ;;  %323 = vmatpush.msra.mxu3 %v1623_v5  ;;  %v184_v39 = vsub.f32 %v1645_v18, %v2663_v27  ;;  %v2659_v40 = vand.u32 4294901760, %v1658_v25  ;;  %v190_v41 = vsub.f32 %v1648_v19, %v2660_v28 }
  0x14   :  { %129 = vmatpush.msra.mxu0 %v1625_v9  ;;  %v167_v37 = vand.u32 4294901760, %v166_v30  ;;  %272 = vmatpush.msra.mxu2 %v1640_v16  ;;  %v173_v38 = vand.u32 4294901760, %v172_v31  ;;  %v1696_v44 = vand.u32 4294901760, %v52_v36  ;;  %v2657_v45 = vand.u32 4294901760, %v1664_v29 }
  0x15   :  { %325 = vmatpush.msra.mxu3 %v1625_v9  ;;  %v179_v43 = vand.u32 4294901760, %v178_v32  ;;  %v1700_v46 = vsub.f32 %v54_v21, %v1677_v33  ;;  %v2656_v47 = vand.u32 4294901760, %v1683_v35  ;;  %v185_v49 = vand.u32 4294901760, %v184_v39  ;;  %v76_v32 = vld [vmem:[#allocation6 + $0xe8] sm:$0xff] }
  0x16   :  { %131 = vmatpush.msra.mxu0 %v1627_v10  ;;  %168 = vmatpush.msra.mxu1 %v167_v37  ;;  %v196_v50 = vsub.f32 %v1658_v25, %v2659_v40  ;;  %v1709_v51 = vand.u32 4294901760, %v51_v42  ;;  %v1712_v52 = vsub.f32 %v53_v26, %v1680_v34  ;;  %v191_v53 = vand.u32 4294901760, %v190_v41  ;;  %v75_v41 = vld [vmem:[#allocation6 + $0xe0] sm:$0xff] }
  0x17   :  { %275 = vmatpush.msra.mxu2 %v1645_v18  ;;  %327 = vmatpush.msra.mxu3 %v1627_v10  ;;  %v202_v55 = vsub.f32 %v1664_v29, %v2657_v45  ;;  %v1720_v56 = vand.u32 4294901760, %v50_v48  ;;  %v2654_v57 = vand.u32 4294901760, %v1700_v46  ;;  %v1724_v58 = vsub.f32 %v52_v36, %v1696_v44  ;;  %v71_v45 = vld [vmem:[#allocation6 + $0xc0] sm:$0xff] }
  0x18   :  { %133 = vmatpush.msra.mxu0 %v1629_v11  ;;  %174 = vmatpush.msra.mxu1 %v173_v38  ;;  %v208_v61 = vsub.f32 %v1683_v35, %v2656_v47  ;;  %v197_v62 = vand.u32 4294901760, %v196_v50  ;;  %v1732_v63 = vand.u32 4294901760, %v49_v54  ;;  %v2653_v0 = vand.u32 4294901760, %v1712_v52 }
  0x19   :  { %278 = vmatpush.msra.mxu2 %v1648_v19  ;;  %329 = vmatpush.msra.mxu3 %v1629_v11  ;;  %v1736_v1 = vsub.f32 %v51_v42, %v1709_v51  ;;  %v1740_v6 = vand.u32 4294901760, %v48_v59  ;;  %v1742_v8 = vand.u32 4294901760, %v78_v60  ;;  %v203_v12 = vand.u32 4294901760, %v202_v55 }
  0x1a   :  { %135 = vmatpush.msra.mxu0 %v1642_v17  ;;  %180 = vmatpush.msra.mxu1 %v179_v43  ;;  %v214_v13 = vsub.f32 %v1700_v46, %v2654_v57  ;;  %v2651_v21 = vand.u32 4294901760, %v1724_v58  ;;  %v1750_v26 = vsub.f32 %v50_v48, %v1720_v56  ;;  %v209_v30 = vand.u32 4294901760, %v208_v61 }
  0x1b   :  { %281 = vmatpush.msra.mxu2 %v1658_v25  ;;  %331 = vmatpush.msra.mxu3 %v1642_v17  ;;  %2690 = vst [vmem:[#allocation12_spill] sm:$0xff] %v1740_v6  ;;  %v1754_v31 = vand.u32 4294901760, %v77_v2  ;;  %v220_v36 = vsub.f32 %v1712_v52, %v2653_v0  ;;  %v1760_v37 = vand.u32 4294901760, %v47_v7  ;;  %v2652_v38 = vand.u32 4294901760, %v1736_v1 }
  0x1c   :  { %137 = vmatpush.msra.mxu0 %v1650_v20  ;;  %186 = vmatpush.msra.mxu1 %v185_v49  ;;  %v1764_v39 = vsub.f32 %v49_v54, %v1732_v63  ;;  %v1769_v42 = vsub.f32 %v48_v59, %v1740_v6  ;;  %v1772_v43 = vsub.f32 %v78_v60, %v1742_v8  ;;  %v215_v48 = vand.u32 4294901760, %v214_v13  ;;  %v74_v59 = vld [vmem:[#allocation6 + $0xd8] sm:$0xff] }
  0x1d   :  { %284 = vmatpush.msra.mxu2 %v1664_v29  ;;  %333 = vmatpush.msra.mxu3 %v1650_v20  ;;  %2691 = vst [vmem:[#allocation13_spill] sm:$0xff] %v1760_v37  ;;  %v226_v49 = vsub.f32 %v1724_v58, %v2651_v21  ;;  %v2655_v50 = vand.u32 4294901760, %v1750_v26  ;;  %v1784_v54 = vsub.f32 %v77_v2, %v1754_v31  ;;  %v1786_v55 = vand.u32 4294901760, %v75_v41  ;;  %v73_v21 = vld [vmem:[#allocation6 + $0xd0] sm:$0xff] }
  0x1e   :  { %139 = vmatpush.msra.mxu0 %v1677_v33  ;;  %192 = vmatpush.msra.mxu1 %v191_v53  ;;  %v1779_v53 = vand.u32 4294901760, %v76_v32  ;;  %v221_v60 = vand.u32 4294901760, %v220_v36  ;;  %v232_v61 = vsub.f32 %v1736_v1, %v2652_v38  ;;  %v2661_v2 = vand.u32 4294901760, %v1769_v42 }
  0x1f   :  { %287 = vmatpush.msra.mxu2 %v1683_v35  ;;  %335 = vmatpush.msra.mxu3 %v1677_v33  ;;  %v2662_v13 = vand.u32 4294901760, %v1772_v43  ;;  %v238_v36 = vsub.f32 %v1750_v26, %v2655_v50  ;;  %v1807_v38 = vand.u32 4294901760, %v74_v59  ;;  %v2665_v0 = vand.u32 4294901760, %v1784_v54 }
  0x20   :  { %141 = vmatpush.msra.mxu0 %v1680_v34  ;;  %198 = vmatpush.msra.mxu1 %v197_v62  ;;  %v2658_v62 = vand.u32 4294901760, %v1764_v39  ;;  %v1813_v57 = vsub.f32 %v75_v41, %v1786_v55  ;;  %v1820_v47 = vand.u32 4294901760, %v73_v21  ;;  %v250_v41 = vsub.f32 %v1769_v42, %v2661_v2 }
  0x21   :  { %290 = vmatpush.msra.mxu2 %v1700_v46  ;;  %337 = vmatpush.msra.mxu3 %v1680_v34  ;;  %v1833_v40 = vsub.f32 %v74_v59, %v1807_v38  ;;  %v513_v2 = vsub.f32 %v1784_v54, %v2665_v0  ;;  %v1843_v27 = vand.u32 4294901760, %v71_v45 }
  0x22   :  { %143 = vmatpush.msra.mxu0 %v1696_v44  ;;  %204 = vmatpush.msra.mxu1 %v203_v12  ;;  %v1794_v12 = vsub.f32 %v47_v7, %v1760_v37  ;;  %v1805_v7 = vsub.f32 %v76_v32, %v1779_v53  ;;  %v244_v32 = vsub.f32 %v1764_v39, %v2658_v62  ;;  %v251_v0 = vand.u32 4294901760, %v250_v41 }
  0x23   :  { %293 = vmatpush.msra.mxu2 %v1712_v52  ;;  %339 = vmatpush.msra.mxu3 %v1696_v44  ;;  %v1850_v24 = vsub.f32 %v73_v21, %v1820_v47  ;;  %v514_v41 = vand.u32 4294901760, %v513_v2  ;;  %v1880_v2 = vand.u32 4294901760, %v68_v14 }
  0x24   :  { %145 = vmatpush.msra.mxu0 %v1709_v51  ;;  %210 = vmatpush.msra.mxu1 %v209_v30  ;;  %v227_v30 = vand.u32 4294901760, %v226_v49  ;;  %v233_v49 = vand.u32 4294901760, %v232_v61  ;;  %v2667_v50 = vand.u32 4294901760, %v1794_v12  ;;  %v239_v61 = vand.u32 4294901760, %v238_v36 }
  0x25   :  { %296 = vmatpush.msra.mxu2 %v1724_v58  ;;  %341 = vmatpush.msra.mxu3 %v1709_v51  ;;  %v2668_v62 = vand.u32 4294901760, %v1805_v7  ;;  %v245_v59 = vand.u32 4294901760, %v244_v32 }
  0x26   :  { %147 = vmatpush.msra.mxu0 %v1720_v56  ;;  %216 = vmatpush.msra.mxu1 %v215_v48  ;;  %v72_v48 = vld [vmem:[#allocation6 + $0xc8] sm:$0xff]  ;;  %v256_v36 = vsub.f32 %v1794_v12, %v2667_v50 }
  0x27   :  { %299 = vmatpush.msra.mxu2 %v1736_v1  ;;  %343 = vmatpush.msra.mxu3 %v1720_v56  ;;  %v1835_v28 = vand.u32 4294901760, %v72_v48 }
  0x28   :  { %149 = vmatpush.msra.mxu0 %v1732_v63  ;;  %222 = vmatpush.msra.mxu1 %v221_v60  ;;  %v507_v60 = vsub.f32 %v1772_v43, %v2662_v13 }
  0x29   :  { %302 = vmatpush.msra.mxu2 %v1750_v26  ;;  %345 = vmatpush.msra.mxu3 %v1732_v63  ;;  %v1861_v21 = vsub.f32 %v72_v48, %v1835_v28  ;;  %v257_v48 = vand.u32 4294901760, %v256_v36 }
  0x2a   :  { %151 = vmatpush.msra.mxu0 %v1740_v6  ;;  %228 = vmatpush.msra.mxu1 %v227_v30  ;;  %v70_v30 = vld [vmem:[#allocation6 + $0xb8] sm:$0xff]  ;;  %v508_v13 = vand.u32 4294901760, %v507_v60  ;;  %v2693_v60 = vand.u32 4294901760, %v1813_v57 }
  0x2b   :  { %305 = vmatpush.msra.mxu2 %v1764_v39  ;;  %347 = vmatpush.msra.mxu3 %v1740_v6  ;;  %v1863_v50 = vand.u32 4294901760, %v70_v30  ;;  %v1882_v6 = vld [vmem:[#allocation3] sm:$0xf] }
  0x2c   :  { %153 = vmatpush.msra.mxu0 %v1760_v37  ;;  %234 = vmatpush.msra.mxu1 %v233_v49  ;;  %v519_v49 = vsub.f32 %v1805_v7, %v2668_v62  ;;  %v1872_v62 = vsub.f32 %v71_v45, %v1843_v27 }
  0x2d   :  { %308 = vmatpush.msra.mxu2 %v1769_v42  ;;  %349 = vmatpush.msra.mxu3 %v1760_v37  ;;  %v1876_v37 = vand.u32 4294901760, %v69_v23  ;;  %v1890_v32 = vsub.f32 %v70_v30, %v1863_v50 }
  0x2e   :  { %360 = vmatpush.msrb.mxu0 %v165_v22  ;;  %240 = vmatpush.msra.mxu1 %v239_v61  ;;  %v2692_v22 = vand.u32 4294901760, %v1636_v15  ;;  %v525_v61 = vsub.f32 %v1813_v57, %v2693_v60  ;;  %v2694_v15 = vand.u32 4294901760, %v1640_v16  ;;  %v520_v45 = vand.u32 4294901760, %v519_v49 }
  0x2f   :  { %311 = vmatpush.msra.mxu2 %v1794_v12  ;;  %509 = vmatpush.msrb.mxu3 %v508_v13  ;;  %v2696_v16 = vand.u32 4294901760, %v1645_v18  ;;  %v2697_v49 = vand.u32 4294901760, %v1850_v24  ;;  %v1900_v60 = vsub.f32 %v69_v23, %v1876_v37  ;;  %v114_v18 = vperm.slane %v1882_v6, 0 }
  0x30   :  { %364 = vmatpush.msrb.mxu0 %v2692_v22  ;;  %246 = vmatpush.msra.mxu1 %v245_v59  ;;  %v67_v22 = vld [vmem:[#allocation6 + $0xa0] sm:$0xff]  ;;  %v2695_v59 = vand.u32 4294901760, %v1833_v40  ;;  %v526_v13 = vand.u32 4294901760, %v525_v61  ;;  %v1909_v61 = vsub.f32 %v68_v14, %v1880_v2 }
  0x31   :  { %464 = vmatpush.msrb.mxu2 %v1742_v8  ;;  %515 = vmatpush.msrb.mxu3 %v514_v41  ;;  %v1902_v30 = vand.u32 4294901760, %v67_v22  ;;  %v2698_v41 = vand.u32 4294901760, %v1648_v19  ;;  %v2700_v19 = vand.u32 4294901760, %v1658_v25  ;;  %v2702_v25 = vand.u32 4294901760, %v1664_v29 }
  0x32   :  { %368 = vmatpush.msrb.mxu0 %v2694_v15  ;;  %252 = vmatpush.msra.mxu1 %v251_v0  ;;  %v531_v36 = vsub.f32 %v1833_v40, %v2695_v59  ;;  %v66_v0 = vld [vmem:[#allocation6 + $0x98] sm:$0xff]  ;;  %v537_v59 = vsub.f32 %v1850_v24, %v2697_v49  ;;  %v1929_v49 = vand.u32 4294901760, %v114_v18  ;;  %v2704_v29 = vand.u32 4294901760, %v1683_v35 }
  0x33   :  { %466 = vmatpush.msrb.mxu2 %v1754_v31  ;;  %521 = vmatpush.msrb.mxu3 %v520_v45  ;;  %v1916_v15 = vand.u32 4294901760, %v66_v0  ;;  %v2706_v35 = vand.u32 4294901760, %v1700_v46  ;;  %v2708_v46 = vand.u32 4294901760, %v1712_v52 }
  0x34   :  { %372 = vmatpush.msrb.mxu0 %v2696_v16  ;;  %258 = vmatpush.msra.mxu1 %v257_v48  ;;  %v532_v48 = vand.u32 4294901760, %v531_v36  ;;  %v2699_v16 = vand.u32 4294901760, %v1861_v21  ;;  %v538_v45 = vand.u32 4294901760, %v537_v59  ;;  %v2703_v59 = vand.u32 4294901760, %v1890_v32 }
  0x35   :  { %468 = vmatpush.msrb.mxu2 %v1779_v53  ;;  %527 = vmatpush.msrb.mxu3 %v526_v13  ;;  %v1942_v36 = vsub.f32 %v66_v0, %v1916_v15 }
  0x36   :  { %376 = vmatpush.msrb.mxu0 %v2698_v41  ;;  %427 = vmatpush.msrb.mxu1 %v1619_v3  ;;  %v543_v23 = vsub.f32 %v1861_v21, %v2699_v16  ;;  %v2701_v3 = vand.u32 4294901760, %v1872_v62  ;;  %v65_v41 = vld [vmem:[#allocation6 + $0x90] sm:$0xff]  ;;  %v1927_v16 = vsub.f32 %v67_v22, %v1902_v30 }
  0x37   :  { %470 = vmatpush.msrb.mxu2 %v1786_v55  ;;  %533 = vmatpush.msrb.mxu3 %v532_v48  ;;  %v1939_v22 = vand.u32 4294901760, %v65_v41  ;;  %v2705_v48 = vand.u32 4294901760, %v1900_v60 }
  0x38   :  { %380 = vmatpush.msrb.mxu0 %v2700_v19  ;;  %429 = vmatpush.msrb.mxu1 %v1621_v4  ;;  %v549_v14 = vsub.f32 %v1872_v62, %v2701_v3  ;;  %v64_v19 = vld [vmem:[#allocation6 + $0x88] sm:$0xff]  ;;  %v544_v13 = vand.u32 4294901760, %v543_v23  ;;  %v555_v3 = vsub.f32 %v1890_v32, %v2703_v59  ;;  %v572_v59 = vand.u32 4294901760, %v1927_v16 }
  0x39   :  { %472 = vmatpush.msrb.mxu2 %v1807_v38  ;;  %539 = vmatpush.msrb.mxu3 %v538_v45  ;;  %v561_v23 = vsub.f32 %v1900_v60, %v2705_v48  ;;  %v1953_v4 = vsub.f32 %v114_v18, %v1929_v49  ;;  %v1955_v0 = vand.u32 4294901760, %v64_v19  ;;  %v1966_v18 = vsub.f32 %v65_v41, %v1939_v22 }
  0x3a   :  { %384 = vmatpush.msrb.mxu0 %v2702_v25  ;;  %431 = vmatpush.msrb.mxu1 %v1623_v5  ;;  %v550_v5 = vand.u32 4294901760, %v549_v14  ;;  %v63_v25 = vld [vmem:[#allocation6 + $0x80] sm:$0xff]  ;;  %v556_v45 = vand.u32 4294901760, %v555_v3 }
  0x3b   :  { %474 = vmatpush.msrb.mxu2 %v1820_v47  ;;  %545 = vmatpush.msrb.mxu3 %v544_v13  ;;  %v1968_v48 = vand.u32 4294901760, %v63_v25  ;;  %v573_v13 = vsub.f32 %v1927_v16, %v572_v59  ;;  %v156_v3 = vand.u32 4294901760, %v1953_v4  ;;  %v1979_v41 = vsub.f32 %v64_v19, %v1955_v0 }
  0x3c   :  { %388 = vmatpush.msrb.mxu0 %v2704_v29  ;;  %433 = vmatpush.msrb.mxu1 %v1625_v9  ;;  %v2707_v9 = vand.u32 4294901760, %v1909_v61  ;;  %v578_v29 = vand.u32 4294901760, %v1942_v36  ;;  %v115_v19 = vperm.slane %v1882_v6, 1 }
  0x3d   :  { %476 = vmatpush.msrb.mxu2 %v1835_v28  ;;  %551 = vmatpush.msrb.mxu3 %v550_v5  ;;  %v584_v5 = vand.u32 4294901760, %v1966_v18 }
  0x3e   :  { %392 = vmatpush.msrb.mxu0 %v2706_v35  ;;  %435 = vmatpush.msrb.mxu1 %v1627_v10  ;;  %v567_v14 = vsub.f32 %v1909_v61, %v2707_v9  ;;  %v562_v10 = vand.u32 4294901760, %v561_v23  ;;  %v2709_v35 = vand.u32 4294901760, %v1724_v58  ;;  %v1990_v23 = vsub.f32 %v63_v25, %v1968_v48 }
  0x3f   :  { %478 = vmatpush.msrb.mxu2 %v1843_v27  ;;  %557 = vmatpush.msrb.mxu3 %v556_v45  ;;  %v2710_v58 = vand.u32 4294901760, %v1736_v1  ;;  %v157_v9 = vsub.f32 %v1953_v4, %v156_v3  ;;  %v2711_v45 = vand.u32 4294901760, %v1750_v26 }
  0x40   :  { %396 = vmatpush.msrb.mxu0 %v2708_v46  ;;  %437 = vmatpush.msrb.mxu1 %v1629_v11  ;;  %v568_v52 = vand.u32 4294901760, %v567_v14  ;;  %v579_v11 = vsub.f32 %v1942_v36, %v578_v29  ;;  %v590_v14 = vand.u32 4294901760, %v1979_v41  ;;  %v596_v25 = vand.u32 4294901760, %v1990_v23 }
  0x41   :  { %480 = vmatpush.msrb.mxu2 %v1863_v50  ;;  %563 = vmatpush.msrb.mxu3 %v562_v10  ;;  %v2007_v46 = vand.u32 4294901760, %v115_v19  ;;  %v2712_v10 = vand.u32 4294901760, %v1764_v39 }
  0x42   :  { %400 = vmatpush.msrb.mxu0 %v2709_v35  ;;  %439 = vmatpush.msrb.mxu1 %v1642_v17  ;;  %v574_v17 = vand.u32 4294901760, %v573_v13  ;;  %v580_v1 = vand.u32 4294901760, %v579_v11  ;;  %v591_v26 = vsub.f32 %v1979_v41, %v590_v14  ;;  %v2713_v13 = vand.u32 4294901760, %v1769_v42 }
  0x43   :  { %482 = vmatpush.msrb.mxu2 %v1876_v37  ;;  %569 = vmatpush.msrb.mxu3 %v568_v52  ;;  %v2024_v35 = vsub.f32 %v115_v19, %v2007_v46  ;;  %v2714_v52 = vand.u32 4294901760, %v1794_v12  ;;  %v2716_v12 = vld [vmem:[#allocation12_spill] sm:$0xff] }
  0x44   :  { %404 = vmatpush.msrb.mxu0 %v2710_v58  ;;  %441 = vmatpush.msrb.mxu1 %v1650_v20  ;;  %v585_v20 = vsub.f32 %v1966_v18, %v584_v5  ;;  %v86_v58 = vld [vmem:[#allocation6 + $0x138] sm:$0xff] }
  0x45   :  { %484 = vmatpush.msrb.mxu2 %v1880_v2  ;;  %575 = vmatpush.msrb.mxu3 %v574_v17  ;;  %v497_v11 = vand.u32 4294901760, %v2024_v35 }
  0x46   :  { %408 = vmatpush.msrb.mxu0 %v2711_v45  ;;  %443 = vmatpush.msrb.mxu1 %v1677_v33  ;;  %v158_v33 = vand.u32 4294901760, %v157_v9  ;;  %v586_v39 = vand.u32 4294901760, %v585_v20  ;;  %v85_v45 = vld [vmem:[#allocation6 + $0x130] sm:$0xff] }
  0x47   :  { %486 = vmatpush.msrb.mxu2 %v1902_v30  ;;  %581 = vmatpush.msrb.mxu3 %v580_v1 }
  0x48   :  { %412 = vmatpush.msrb.mxu0 %v2712_v10  ;;  %445 = vmatpush.msrb.mxu1 %v1680_v34  ;;  %v597_v34 = vsub.f32 %v1990_v23, %v596_v25 }
  0x49   :  { %488 = vmatpush.msrb.mxu2 %v1916_v15  ;;  %159 = vmatmul.f32.vlgmr.msra.gmra.mxu0 %v158_v33  ;;  %v84_v33 = vld [vmem:[#allocation6 + $0x128] sm:$0xff] }
  0x4a   :  { %416 = vmatpush.msrb.mxu0 %v2713_v13  ;;  %447 = vmatpush.msrb.mxu1 %v1696_v44  ;;  %v592_v44 = vand.u32 4294901760, %v591_v26  ;;  %v598_v42 = vand.u32 4294901760, %v597_v34  ;;  %v2192_v13 = vand.u32 4294901760, %v85_v45  ;;  %v83_v34 = vld [vmem:[#allocation6 + $0x120] sm:$0xff] }
  0x4b   :  { %490 = vmatpush.msrb.mxu2 %v1939_v22  ;;  %587 = vmatpush.msrb.mxu3 %v586_v39 }
  0x4c   :  { %420 = vmatpush.msrb.mxu0 %v2714_v52  ;;  %449 = vmatpush.msrb.mxu1 %v1709_v51  ;;  %v2715_v51 = vand.u32 4294901760, %v1772_v43  ;;  %v116_v52 = vperm.slane %v1882_v6, 2 }
  0x4d   :  { %492 = vmatpush.msrb.mxu2 %v1955_v0  ;;  %593 = vmatpush.msrb.mxu3 %v592_v44 }
  0x4e   :  { %607 = vmatpush.msra.mxu0 %v1772_v43  ;;  %451 = vmatpush.msrb.mxu1 %v1720_v56  ;;  %v498_v56 = vsub.f32 %v2024_v35, %v497_v11  ;;  %v2719_v43 = vand.u32 4294901760, %v1805_v7 }
  0x4f   :  { %494 = vmatpush.msrb.mxu2 %v1968_v48  ;;  %599 = vmatpush.msrb.mxu3 %v598_v42  ;;  %v2205_v42 = vand.u32 4294901760, %v84_v33 }
  0x50   :  { %610 = vmatpush.msra.mxu0 %v1784_v54  ;;  %453 = vmatpush.msrb.mxu1 %v1732_v63  ;;  %v2717_v63 = vand.u32 4294901760, %v1784_v54  ;;  %v499_v19 = vand.u32 4294901760, %v498_v56  ;;  %v2720_v54 = vand.u32 4294901760, %v1813_v57 }
  0x51   :  { %314 = vmatmul.f32.vlgmr.msra.gmra.mxu2 %v1953_v4  ;;  %353 = vmatmul.f32.vlgmr.msra.gmra.mxu3 %v156_v3  ;;  %v2718_v4 = vld [vmem:[#allocation13_spill] sm:$0xff] }
  0x52   :  { %613 = vmatpush.msra.mxu0 %v1805_v7  ;;  %701 = vmatpush.msra.mxu2 %v2715_v51  ;;  %v2721_v7 = vand.u32 4294901760, %v1833_v40 }
  0x53   :  { %455 = vmatpush.msrb.mxu1 %v2716_v12  ;;  %768 = vmatpush.msra.mxu3 %v1742_v8  ;;  %v82_v12 = vld [vmem:[#allocation6 + $0x118] sm:$0xff] }
  0x54   :  { %616 = vmatpush.msra.mxu0 %v1813_v57  ;;  %705 = vmatpush.msra.mxu2 %v2717_v63  ;;  %v2722_v57 = vand.u32 4294901760, %v1850_v24  ;;  %v2217_v63 = vand.u32 4294901760, %v83_v34 }
  0x55   :  { %457 = vmatpush.msrb.mxu1 %v2718_v4  ;;  %770 = vmatpush.msra.mxu3 %v1754_v31 }
  0x56   :  { %619 = vmatpush.msra.mxu0 %v1833_v40  ;;  %260 = vmatmul.f32.vlgmr.msra.gmra.mxu1 %v1929_v49  ;;  %v2723_v40 = vand.u32 4294901760, %v1861_v21 }
  0x57   :  { %709 = vmatpush.msra.mxu2 %v2719_v43  ;;  %660 = vmatpush.msra.mxu1 %v1742_v8  ;;  %v94_v8 = vld [vmem:[#allocation6 + $0x178] sm:$0xff]  ;;  %v2221_v43 = vsub.f32 %v85_v45, %v2192_v13  ;;  %v79_v45 = vld [vmem:[#allocation6 + $0x100] sm:$0xff] }
  0x58   :  { %622 = vmatpush.msra.mxu0 %v1850_v24  ;;  %772 = vmatpush.msra.mxu3 %v1779_v53  ;;  %v2724_v24 = vand.u32 4294901760, %v1872_v62 }
  0x59   :  { %713 = vmatpush.msra.mxu2 %v2720_v54  ;;  %662 = vmatpush.msra.mxu1 %v1754_v31  ;;  %v2725_v31 = vand.u32 4294901760, %v1890_v32  ;;  %v81_v54 = vld [vmem:[#allocation6 + $0x110] sm:$0xff] }
  0x5a   :  { %500 = vmatmul.f32.vlgmr.msrb.gmra.mxu2 %v499_v19  ;;  %625 = vmatpush.msra.mxu0 %v1861_v21  ;;  %v90_v21 = vld [vmem:[#allocation6 + $0x158] sm:$0xff] }
  0x5b   :  { %664 = vmatpush.msra.mxu1 %v1779_v53  ;;  %717 = vmatpush.msra.mxu2 %v2721_v7  ;;  %v2093_v53 = vand.u32 4294901760, %v94_v8  ;;  %v2225_v7 = vand.u32 4294901760, %v116_v52 }
  0x5c   :  { %774 = vmatpush.msra.mxu3 %v1786_v55  ;;  %422 = vmatmul.f32.vlgmr.msrb.gmra.mxu0 %v1929_v49 }
  0x5d   :  { %601 = vmatmul.f32.vlgmr.msrb.gmra.mxu3 %v2007_v46  ;;  %628 = vmatpush.msra.mxu0 %v1872_v62 }
  0x5e   :  { %666 = vmatpush.msra.mxu1 %v1786_v55  ;;  %721 = vmatpush.msra.mxu2 %v2722_v57  ;;  %v2727_v55 = vand.u32 4294901760, %v1909_v61 }
  0x5f   :  { %776 = vmatpush.msra.mxu3 %v1807_v38  ;;  %459 = vmatmul.f32.vlgmr.msrb.gmra.mxu1 %v1929_v49  ;;  %v2124_v49 = vand.u32 4294901760, %v90_v21 }
  0x60   :  { %631 = vmatpush.msra.mxu0 %v1890_v32  ;;  %668 = vmatpush.msra.mxu1 %v1807_v38  ;;  %v2726_v38 = vand.u32 4294901760, %v1900_v60 }
  0x61   :  { %725 = vmatpush.msra.mxu2 %v2723_v40  ;;  %778 = vmatpush.msra.mxu3 %v1820_v47  ;;  %v2231_v40 = vand.u32 4294901760, %v82_v12 }
  0x62   :  { %634 = vmatpush.msra.mxu0 %v1900_v60  ;;  %670 = vmatpush.msra.mxu1 %v1820_v47  ;;  %v93_v47 = vld [vmem:[#allocation6 + $0x170] sm:$0xff] }
  0x63   :  { %729 = vmatpush.msra.mxu2 %v2724_v24  ;;  %780 = vmatpush.msra.mxu3 %v1835_v28  ;;  %v2100_v62 = vand.u32 4294901760, %v93_v47 }
  0x64   :  { %637 = vmatpush.msra.mxu0 %v1909_v61  ;;  %672 = vmatpush.msra.mxu1 %v1835_v28  ;;  %v92_v28 = vld [vmem:[#allocation6 + $0x168] sm:$0xff]  ;;  %v89_v61 = vld [vmem:[#allocation6 + $0x150] sm:$0xff] }
  0x65   :  { %733 = vmatpush.msra.mxu2 %v2725_v31  ;;  %782 = vmatpush.msra.mxu3 %v1843_v27  ;;  %v2107_v32 = vand.u32 4294901760, %v92_v28  ;;  %v2120_v60 = vsub.f32 %v93_v47, %v2100_v62 }
  0x66   :  { %640 = vmatpush.msra.mxu0 %v1927_v16  ;;  %674 = vmatpush.msra.mxu1 %v1843_v27  ;;  %v91_v27 = vld [vmem:[#allocation6 + $0x160] sm:$0xff]  ;;  %v2135_v16 = vand.u32 4294901760, %v89_v61 }
  0x67   :  { %737 = vmatpush.msra.mxu2 %v2726_v38  ;;  %784 = vmatpush.msra.mxu3 %v1863_v50  ;;  %v2243_v38 = vand.u32 4294901760, %v81_v54 }
  0x68   :  { %643 = vmatpush.msra.mxu0 %v1942_v36  ;;  %676 = vmatpush.msra.mxu1 %v1863_v50  ;;  %v2110_v50 = vsub.f32 %v94_v8, %v2093_v53  ;;  %v2131_v36 = vsub.f32 %v92_v28, %v2107_v32  ;;  %v2235_v8 = vsub.f32 %v84_v33, %v2205_v42  ;;  %v2673_v28 = vand.u32 4294901760, %v2221_v43 }
  0x69   :  { %741 = vmatpush.msra.mxu2 %v2727_v55  ;;  %786 = vmatpush.msra.mxu3 %v1876_v37  ;;  %v2247_v55 = vsub.f32 %v83_v34, %v2217_v63  ;;  %v109_v34 = vld [vmem:[#allocation6 + $0x1f0] sm:$0xff] }
  0x6a   :  { %646 = vmatpush.msra.mxu0 %v1966_v18  ;;  %678 = vmatpush.msra.mxu1 %v1876_v37  ;;  %v2117_v37 = vand.u32 4294901760, %v91_v27  ;;  %v2147_v18 = vsub.f32 %v90_v21, %v2124_v49  ;;  %v2252_v21 = vsub.f32 %v116_v52, %v2225_v7 }
  0x6b   :  { %745 = vmatpush.msra.mxu2 %v572_v59  ;;  %788 = vmatpush.msra.mxu3 %v1880_v2  ;;  %v88_v59 = vld [vmem:[#allocation6 + $0x148] sm:$0xff]  ;;  %v2671_v33 = vand.u32 4294901760, %v2247_v55 }
  0x6c   :  { %649 = vmatpush.msra.mxu0 %v1979_v41  ;;  %680 = vmatpush.msra.mxu1 %v1880_v2  ;;  %v847_v2 = vand.u32 4294901760, %v2110_v50  ;;  %v2155_v41 = vand.u32 4294901760, %v88_v59 }
  0x6d   :  { %749 = vmatpush.msra.mxu2 %v578_v29  ;;  %790 = vmatpush.msra.mxu3 %v1902_v30  ;;  %v2142_v29 = vsub.f32 %v91_v27, %v2117_v37  ;;  %v80_v27 = vld [vmem:[#allocation6 + $0x108] sm:$0xff] }
  0x6e   :  { %652 = vmatpush.msra.mxu0 %v1990_v23  ;;  %682 = vmatpush.msra.mxu1 %v1902_v30  ;;  %v853_v30 = vand.u32 4294901760, %v2120_v60  ;;  %v848_v3 = vsub.f32 %v2110_v50, %v847_v2  ;;  %v2182_v10 = vsub.f32 %v88_v59, %v2155_v41 }
  0x6f   :  { %753 = vmatpush.msra.mxu2 %v584_v5  ;;  %792 = vmatpush.msra.mxu3 %v1916_v15  ;;  %v859_v5 = vand.u32 4294901760, %v2131_v36  ;;  %v2681_v9 = vand.u32 4294901760, %v2142_v29 }
  0x70   :  { %655 = vmatmul.f32.vlgmr.msra.gmra.mxu0 %v2024_v35  ;;  %684 = vmatpush.msra.mxu1 %v1916_v15  ;;  %v87_v15 = vld [vmem:[#allocation6 + $0x140] sm:$0xff]  ;;  %v854_v23 = vsub.f32 %v2120_v60, %v853_v30  ;;  %v849_v1 = vand.u32 4294901760, %v848_v3  ;;  %v2677_v51 = vand.u32 4294901760, %v2182_v10  ;;  %v2260_v3 = vsub.f32 %v82_v12, %v2231_v40 }
  0x71   :  { %805 = vmatpush.msrb.mxu0 %v2093_v53  ;;  %757 = vmatpush.msra.mxu2 %v590_v14  ;;  %v2168_v17 = vand.u32 4294901760, %v87_v15  ;;  %v2680_v14 = vand.u32 4294901760, %v2147_v18  ;;  %v860_v20 = vsub.f32 %v2131_v36, %v859_v5  ;;  %v866_v26 = vsub.f32 %v2142_v29, %v2681_v9 }
  0x72   :  { %794 = vmatpush.msra.mxu3 %v1939_v22  ;;  %686 = vmatpush.msra.mxu1 %v1939_v22  ;;  %v2161_v22 = vsub.f32 %v89_v61, %v2135_v16  ;;  %v884_v57 = vsub.f32 %v2182_v10, %v2677_v51  ;;  %v2674_v12 = vand.u32 4294901760, %v2260_v3 }
  0x73   :  { %807 = vmatpush.msrb.mxu0 %v2100_v62  ;;  %761 = vmatpush.msra.mxu2 %v596_v25  ;;  %v2179_v25 = vand.u32 4294901760, %v86_v58  ;;  %v2195_v39 = vsub.f32 %v87_v15, %v2168_v17  ;;  %v861_v44 = vand.u32 4294901760, %v860_v20  ;;  %v867_v56 = vand.u32 4294901760, %v866_v26 }
  0x74   :  { %796 = vmatpush.msra.mxu3 %v1955_v0  ;;  %763 = vmatmul.f32.vlgmr.msra.gmra.mxu2 %v2007_v46  ;;  %v885_v61 = vand.u32 4294901760, %v884_v57  ;;  %v2672_v15 = vand.u32 4294901760, %v2235_v8  ;;  %v902_v20 = vsub.f32 %v2221_v43, %v2673_v28  ;;  %v2684_v26 = vand.u32 4294901760, %v2252_v21  ;;  %v106_v28 = vld [vmem:[#allocation6 + $0x1d8] sm:$0xff] }
  0x75   :  { %809 = vmatpush.msrb.mxu0 %v2107_v32  ;;  %948 = vmatpush.msrb.mxu2 %v2110_v50  ;;  %v2209_v35 = vsub.f32 %v86_v58, %v2179_v25  ;;  %v2676_v4 = vand.u32 4294901760, %v2195_v39  ;;  %v110_v58 = vld [vmem:[#allocation6 + $0x1f8] sm:$0xff]  ;;  %v914_v57 = vsub.f32 %v2247_v55, %v2671_v33  ;;  %v2330_v51 = vand.u32 4294901760, %v106_v28 }
  0x76   :  { %688 = vmatpush.msra.mxu1 %v1955_v0  ;;  %798 = vmatpush.msra.mxu3 %v1968_v48  ;;  %v2678_v0 = vand.u32 4294901760, %v2161_v22 }
  0x77   :  { %800 = vmatmul.f32.vlgmr.msra.gmra.mxu3 %v2007_v46  ;;  %811 = vmatpush.msrb.mxu0 %v2117_v37  ;;  %v855_v46 = vand.u32 4294901760, %v854_v23  ;;  %v2675_v24 = vand.u32 4294901760, %v2209_v35  ;;  %v890_v47 = vsub.f32 %v2195_v39, %v2676_v4  ;;  %v2264_v23 = vand.u32 4294901760, %v80_v27 }
  0x78   :  { %951 = vmatpush.msrb.mxu2 %v2120_v60  ;;  %1001 = vmatpush.msrb.mxu3 %v2093_v53 }
  0x79   :  { %690 = vmatpush.msra.mxu1 %v1968_v48  ;;  %813 = vmatpush.msrb.mxu0 %v2124_v49  ;;  %v872_v48 = vsub.f32 %v2147_v18, %v2680_v14  ;;  %v896_v59 = vsub.f32 %v2209_v35, %v2675_v24 }
  0x7a   :  { %694 = vmatmul.f32.vlgmr.msra.gmra.mxu1 %v497_v11  ;;  %954 = vmatpush.msrb.mxu2 %v2131_v36  ;;  %v878_v11 = vsub.f32 %v2161_v22, %v2678_v0 }
  0x7b   :  { %850 = vmatpush.msrb.mxu1 %v849_v1  ;;  %1003 = vmatpush.msrb.mxu3 %v2100_v62  ;;  %v873_v19 = vand.u32 4294901760, %v872_v48  ;;  %v891_v1 = vand.u32 4294901760, %v890_v47  ;;  %v2277_v48 = vand.u32 4294901760, %v110_v58  ;;  %v897_v52 = vand.u32 4294901760, %v896_v59 }
  0x7c   :  { %815 = vmatpush.msrb.mxu0 %v2135_v16  ;;  %957 = vmatpush.msrb.mxu2 %v2142_v29  ;;  %v879_v31 = vand.u32 4294901760, %v878_v11  ;;  %v2283_v11 = vand.u32 4294901760, %v79_v45  ;;  %v2296_v47 = vand.u32 4294901760, %v109_v34 }
  0x7d   :  { %856 = vmatpush.msrb.mxu1 %v855_v46  ;;  %1005 = vmatpush.msrb.mxu3 %v2107_v32  ;;  %v2272_v46 = vsub.f32 %v81_v54, %v2243_v38  ;;  %v903_v54 = vand.u32 4294901760, %v902_v20  ;;  %v2304_v59 = vsub.f32 %v110_v58, %v2277_v48  ;;  %v920_v20 = vsub.f32 %v2260_v3, %v2674_v12 }
  0x7e   :  { %817 = vmatpush.msrb.mxu0 %v2155_v41  ;;  %960 = vmatpush.msrb.mxu2 %v2147_v18  ;;  %2728 = vst [vmem:[#allocation12_spill] sm:$0xff] %v2283_v11  ;;  %v2311_v33 = vsub.f32 %v79_v45, %v2283_v11  ;;  %v2325_v12 = vsub.f32 %v109_v34, %v2296_v47 }
  0x7f   :  { %862 = vmatpush.msrb.mxu1 %v861_v44  ;;  %1007 = vmatpush.msrb.mxu3 %v2117_v37  ;;  %v908_v44 = vsub.f32 %v2235_v8, %v2672_v15  ;;  %v2683_v4 = vand.u32 4294901760, %v2304_v59 }
  0x80   :  { %819 = vmatpush.msrb.mxu0 %v2168_v17  ;;  %963 = vmatpush.msrb.mxu2 %v2161_v22  ;;  %v2685_v0 = vand.u32 4294901760, %v2311_v33  ;;  %v2686_v14 = vand.u32 4294901760, %v2325_v12 }
  0x81   :  { %868 = vmatpush.msrb.mxu1 %v867_v56  ;;  %1009 = vmatpush.msrb.mxu3 %v2124_v49  ;;  %v2289_v56 = vsub.f32 %v80_v27, %v2264_v23  ;;  %v839_v27 = vsub.f32 %v2252_v21, %v2684_v26  ;;  %v1189_v9 = vsub.f32 %v2304_v59, %v2683_v4  ;;  %v102_v26 = vld [vmem:[#allocation6 + $0x1b8] sm:$0xff] }
  0x82   :  { %821 = vmatpush.msrb.mxu0 %v2179_v25  ;;  %966 = vmatpush.msrb.mxu2 %v2182_v10  ;;  %v1195_v50 = vsub.f32 %v2325_v12, %v2686_v14  ;;  %v2730_v14 = vand.u32 4294901760, %v2252_v21 }
  0x83   :  { %874 = vmatpush.msrb.mxu1 %v873_v19  ;;  %1011 = vmatpush.msrb.mxu3 %v2135_v16  ;;  %v108_v19 = vld [vmem:[#allocation6 + $0x1e8] sm:$0xff]  ;;  %v2682_v58 = vand.u32 4294901760, %v2289_v56  ;;  %v840_v24 = vand.u32 4294901760, %v839_v27 }
  0x84   :  { %823 = vmatpush.msrb.mxu0 %v2192_v13  ;;  %969 = vmatpush.msrb.mxu2 %v2195_v39  ;;  %v2313_v15 = vand.u32 4294901760, %v108_v19 }
  0x85   :  { %880 = vmatpush.msrb.mxu1 %v879_v31  ;;  %1013 = vmatpush.msrb.mxu3 %v2155_v41  ;;  %v2679_v31 = vand.u32 4294901760, %v2272_v46  ;;  %v932_v34 = vsub.f32 %v2289_v56, %v2682_v58  ;;  %v2354_v58 = vsub.f32 %v106_v28, %v2330_v51  ;;  %v101_v28 = vld [vmem:[#allocation6 + $0x1b0] sm:$0xff] }
  0x86   :  { %825 = vmatpush.msrb.mxu0 %v2205_v42  ;;  %972 = vmatpush.msrb.mxu2 %v2209_v35 }
  0x87   :  { %886 = vmatpush.msrb.mxu1 %v885_v61  ;;  %1015 = vmatpush.msrb.mxu3 %v2168_v17  ;;  %v107_v61 = vld [vmem:[#allocation6 + $0x1e0] sm:$0xff]  ;;  %v926_v45 = vsub.f32 %v2272_v46, %v2679_v31  ;;  %v2335_v31 = vsub.f32 %v108_v19, %v2313_v15  ;;  %v933_v4 = vand.u32 4294901760, %v932_v34  ;;  %v1190_v34 = vand.u32 4294901760, %v1189_v9 }
  0x88   :  { %827 = vmatpush.msrb.mxu0 %v2217_v63  ;;  %975 = vmatpush.msrb.mxu2 %v2221_v43 }
  0x89   :  { %892 = vmatpush.msrb.mxu1 %v891_v1  ;;  %1017 = vmatpush.msrb.mxu3 %v2179_v25  ;;  %v909_v1 = vand.u32 4294901760, %v908_v44  ;;  %v915_v44 = vand.u32 4294901760, %v914_v57  ;;  %v921_v57 = vand.u32 4294901760, %v920_v20  ;;  %v927_v20 = vand.u32 4294901760, %v926_v45 }
  0x8a   :  { %829 = vmatpush.msrb.mxu0 %v2231_v40  ;;  %978 = vmatpush.msrb.mxu2 %v2235_v8 }
  0x8b   :  { %898 = vmatpush.msrb.mxu1 %v897_v52  ;;  %1019 = vmatpush.msrb.mxu3 %v2192_v13  ;;  %v2318_v52 = vand.u32 4294901760, %v107_v61 }
  0x8c   :  { %831 = vmatpush.msrb.mxu0 %v2243_v38  ;;  %981 = vmatpush.msrb.mxu2 %v2247_v55 }
  0x8d   :  { %904 = vmatpush.msrb.mxu1 %v903_v54  ;;  %1021 = vmatpush.msrb.mxu3 %v2205_v42  ;;  %v105_v54 = vld [vmem:[#allocation6 + $0x1d0] sm:$0xff]  ;;  %v2343_v27 = vsub.f32 %v107_v61, %v2318_v52  ;;  %v103_v61 = vld [vmem:[#allocation6 + $0x1c0] sm:$0xff] }
  0x8e   :  { %833 = vmatpush.msrb.mxu0 %v2264_v23  ;;  %984 = vmatpush.msrb.mxu2 %v2260_v3  ;;  %v2347_v19 = vand.u32 4294901760, %v105_v54 }
  0x8f   :  { %910 = vmatpush.msrb.mxu1 %v909_v1  ;;  %1023 = vmatpush.msrb.mxu3 %v2217_v63  ;;  %v104_v1 = vld [vmem:[#allocation6 + $0x1c8] sm:$0xff]  ;;  %v2729_v9 = vand.u32 4294901760, %v2343_v27 }
  0x90   :  { %835 = vmatpush.msrb.mxu0 %v2283_v11  ;;  %987 = vmatpush.msrb.mxu2 %v2272_v46  ;;  %v2362_v45 = vand.u32 4294901760, %v104_v1 }
  0x91   :  { %916 = vmatpush.msrb.mxu1 %v915_v44  ;;  %1025 = vmatpush.msrb.mxu3 %v2231_v40  ;;  %v938_v44 = vsub.f32 %v2311_v33, %v2685_v0  ;;  %v1207_v36 = vsub.f32 %v2343_v27, %v2729_v9  ;;  %v2732_v9 = vand.u32 4294901760, %v2354_v58 }
  0x92   :  { %841 = vmatmul.f32.vlgmr.msrb.gmra.mxu0 %v840_v24  ;;  %990 = vmatpush.msrb.mxu2 %v2289_v56  ;;  %v2687_v24 = vand.u32 4294901760, %v2335_v31 }
  0x93   :  { %1042 = vmatpush.msra.mxu0 %v847_v2  ;;  %922 = vmatpush.msrb.mxu1 %v921_v57  ;;  %v2373_v2 = vsub.f32 %v105_v54, %v2347_v19  ;;  %v2375_v57 = vand.u32 4294901760, %v103_v61  ;;  %v939_v60 = vand.u32 4294901760, %v938_v44  ;;  %v2387_v54 = vsub.f32 %v104_v1, %v2362_v45  ;;  %v98_v1 = vld [vmem:[#allocation6 + $0x198] sm:$0xff] }
  0x94   :  { %1027 = vmatpush.msrb.mxu3 %v2243_v38  ;;  %993 = vmatpush.msrb.mxu2 %v2311_v33  ;;  %v2731_v44 = vand.u32 4294901760, %v2142_v29  ;;  %v2733_v29 = vand.u32 4294901760, %v2147_v18 }
  0x95   :  { %1046 = vmatpush.msra.mxu0 %v853_v30  ;;  %928 = vmatpush.msrb.mxu1 %v927_v20  ;;  %v1201_v30 = vsub.f32 %v2335_v31, %v2687_v24  ;;  %v2389_v20 = vand.u32 4294901760, %v102_v26  ;;  %v1196_v24 = vand.u32 4294901760, %v1195_v50  ;;  %v2401_v0 = vsub.f32 %v103_v61, %v2375_v57 }
  0x96   :  { %1029 = vmatpush.msrb.mxu3 %v2264_v23  ;;  %996 = vmatmul.f32.vlgmr.msrb.gmra.mxu2 %v2252_v21  ;;  %v99_v21 = vld [vmem:[#allocation6 + $0x1a0] sm:$0xff]  ;;  %v2689_v50 = vand.u32 4294901760, %v2387_v54  ;;  %v2734_v18 = vand.u32 4294901760, %v2373_v2 }
  0x97   :  { %1050 = vmatpush.msra.mxu0 %v859_v5  ;;  %1146 = vmatpush.msra.mxu2 %v2277_v48  ;;  %v100_v5 = vld [vmem:[#allocation6 + $0x1a8] sm:$0xff]  ;;  %v2413_v61 = vsub.f32 %v102_v26, %v2389_v20 }
  0x98   :  { %934 = vmatpush.msrb.mxu1 %v933_v4  ;;  %1031 = vmatpush.msrb.mxu3 %v2283_v11  ;;  %v2403_v4 = vand.u32 4294901760, %v101_v28  ;;  %v1213_v11 = vsub.f32 %v2354_v58, %v2732_v9  ;;  %v2427_v9 = vand.u32 4294901760, %v99_v21 }
  0x99   :  { %1035 = vmatmul.f32.vlgmr.msrb.gmra.mxu3 %v2730_v14  ;;  %1054 = vmatpush.msra.mxu0 %v2731_v44  ;;  %v1202_v14 = vand.u32 4294901760, %v1201_v30  ;;  %v2415_v44 = vand.u32 4294901760, %v100_v5  ;;  %v97_v30 = vld [vmem:[#allocation6 + $0x190] sm:$0xff] }
  0x9a   :  { %1148 = vmatpush.msra.mxu2 %v2296_v47  ;;  %1191 = vmatpush.msra.mxu3 %v1190_v34  ;;  %v1208_v34 = vand.u32 4294901760, %v1207_v36  ;;  %v2425_v26 = vsub.f32 %v101_v28, %v2403_v4  ;;  %v1214_v36 = vand.u32 4294901760, %v1213_v11 }
  0x9b   :  { %940 = vmatpush.msrb.mxu1 %v939_v60  ;;  %1058 = vmatpush.msra.mxu0 %v2733_v29  ;;  %v1219_v60 = vsub.f32 %v2373_v2, %v2734_v18  ;;  %v2735_v29 = vand.u32 4294901760, %v2161_v22  ;;  %v2438_v28 = vsub.f32 %v100_v5, %v2415_v44  ;;  %v2440_v18 = vand.u32 4294901760, %v98_v1 }
  0x9c   :  { %942 = vmatmul.f32.vlgmr.msrb.gmra.mxu1 %v2225_v7  ;;  %1150 = vmatpush.msra.mxu2 %v2313_v15  ;;  %v2736_v22 = vand.u32 4294901760, %v2182_v10  ;;  %v1242_v5 = vand.u32 4294901760, %v2425_v26  ;;  %v2738_v10 = vand.u32 4294901760, %v2195_v39  ;;  %v2740_v39 = vand.u32 4294901760, %v2209_v35 }
  0x9d   :  { %1109 = vmatpush.msra.mxu1 %v2093_v53  ;;  %1197 = vmatpush.msra.mxu3 %v1196_v24  ;;  %v1225_v53 = vsub.f32 %v2387_v54, %v2689_v50  ;;  %v1220_v11 = vand.u32 4294901760, %v1219_v60  ;;  %v2452_v50 = vsub.f32 %v99_v21, %v2427_v9  ;;  %v96_v24 = vld [vmem:[#allocation6 + $0x188] sm:$0xff]  ;;  %v2465_v21 = vsub.f32 %v98_v1, %v2440_v18 }
  0x9e   :  { %1062 = vmatpush.msra.mxu0 %v2735_v29  ;;  %1152 = vmatpush.msra.mxu2 %v2318_v52 }
  0x9f   :  { %1111 = vmatpush.msra.mxu1 %v2100_v62  ;;  %1203 = vmatpush.msra.mxu3 %v1202_v14  ;;  %v117_v62 = vperm.slane %v1882_v6, 3  ;;  %v2737_v14 = vand.u32 4294901760, %v2401_v0  ;;  %v2457_v6 = vand.u32 4294901760, %v97_v30  ;;  %v1254_v1 = vand.u32 4294901760, %v2452_v50 }
  0xa0   :  { %1066 = vmatpush.msra.mxu0 %v2736_v22  ;;  %1154 = vmatpush.msra.mxu2 %v2330_v51  ;;  %v1248_v22 = vand.u32 4294901760, %v2438_v28 }
  0xa1   :  { %1113 = vmatpush.msra.mxu1 %v2107_v32  ;;  %1209 = vmatpush.msra.mxu3 %v1208_v34  ;;  %v1231_v29 = vsub.f32 %v2401_v0, %v2737_v14  ;;  %v1226_v32 = vand.u32 4294901760, %v1225_v53  ;;  %v2739_v34 = vand.u32 4294901760, %v2413_v61  ;;  %v95_v14 = vld [vmem:[#allocation6 + $0x180] sm:$0xff]  ;;  %v1243_v53 = vsub.f32 %v2425_v26, %v1242_v5 }
  0xa2   :  { %1070 = vmatpush.msra.mxu0 %v2738_v10  ;;  %1156 = vmatpush.msra.mxu2 %v2347_v19  ;;  %v2470_v10 = vand.u32 4294901760, %v96_v24  ;;  %v2483_v35 = vsub.f32 %v97_v30, %v2457_v6 }
  0xa3   :  { %1115 = vmatpush.msra.mxu1 %v2117_v37  ;;  %1215 = vmatpush.msra.mxu3 %v1214_v36  ;;  %v1237_v60 = vsub.f32 %v2413_v61, %v2739_v34  ;;  %v2472_v37 = vand.u32 4294901760, %v117_v62  ;;  %v1232_v36 = vand.u32 4294901760, %v1231_v29  ;;  %v2741_v34 = vand.u32 4294901760, %v2221_v43 }
  0xa4   :  { %1074 = vmatpush.msra.mxu0 %v2740_v39  ;;  %1158 = vmatpush.msra.mxu2 %v2362_v45  ;;  %v2485_v39 = vand.u32 4294901760, %v95_v14  ;;  %v1260_v29 = vand.u32 4294901760, %v2465_v21  ;;  %v2742_v43 = vand.u32 4294901760, %v2235_v8  ;;  %v2496_v30 = vsub.f32 %v96_v24, %v2470_v10 }
  0xa5   :  { %1117 = vmatpush.msra.mxu1 %v2124_v49  ;;  %1221 = vmatpush.msra.mxu3 %v1220_v11  ;;  %v1238_v49 = vand.u32 4294901760, %v1237_v60  ;;  %v1249_v11 = vsub.f32 %v2438_v28, %v1248_v22  ;;  %v2743_v60 = vand.u32 4294901760, %v2247_v55  ;;  %v1266_v8 = vand.u32 4294901760, %v2483_v35 }
  0xa6   :  { %1078 = vmatpush.msra.mxu0 %v2741_v34  ;;  %1160 = vmatpush.msra.mxu2 %v2375_v57  ;;  %v2499_v34 = vsub.f32 %v117_v62, %v2472_v37  ;;  %v2510_v24 = vsub.f32 %v95_v14, %v2485_v39  ;;  %v1261_v62 = vsub.f32 %v2465_v21, %v1260_v29  ;;  %v1272_v55 = vand.u32 4294901760, %v2496_v30 }
  0xa7   :  { %1119 = vmatpush.msra.mxu1 %v2135_v16  ;;  %1227 = vmatpush.msra.mxu3 %v1226_v32  ;;  %v1244_v16 = vand.u32 4294901760, %v1243_v53  ;;  %v1255_v32 = vsub.f32 %v2452_v50, %v1254_v1 }
  0xa8   :  { %1082 = vmatpush.msra.mxu0 %v2742_v43  ;;  %1162 = vmatpush.msra.mxu2 %v2389_v20  ;;  %v1179_v53 = vand.u32 4294901760, %v2499_v34  ;;  %v2746_v43 = vand.u32 4294901760, %v2289_v56 }
  0xa9   :  { %1121 = vmatpush.msra.mxu1 %v2155_v41  ;;  %1233 = vmatpush.msra.mxu3 %v1232_v36  ;;  %v1250_v41 = vand.u32 4294901760, %v1249_v11  ;;  %v2744_v36 = vand.u32 4294901760, %v2260_v3  ;;  %v1256_v14 = vand.u32 4294901760, %v1255_v32  ;;  %v1267_v3 = vsub.f32 %v2483_v35, %v1266_v8 }
  0xaa   :  { %1086 = vmatpush.msra.mxu0 %v2743_v60  ;;  %1164 = vmatpush.msra.mxu2 %v2403_v4  ;;  %v1262_v11 = vand.u32 4294901760, %v1261_v62 }
  0xab   :  { %1123 = vmatpush.msra.mxu1 %v2168_v17  ;;  %1239 = vmatpush.msra.mxu3 %v1238_v49  ;;  %v2745_v17 = vand.u32 4294901760, %v2272_v46  ;;  %v1278_v49 = vand.u32 4294901760, %v2510_v24  ;;  %v1180_v46 = vsub.f32 %v2499_v34, %v1179_v53  ;;  %v1268_v56 = vand.u32 4294901760, %v1267_v3 }
  0xac   :  { %1090 = vmatpush.msra.mxu0 %v2744_v36  ;;  %1166 = vmatpush.msra.mxu2 %v2415_v44 }
  0xad   :  { %1125 = vmatpush.msra.mxu1 %v2179_v25  ;;  %1245 = vmatpush.msra.mxu3 %v1244_v16  ;;  %v1273_v25 = vsub.f32 %v2496_v30, %v1272_v55  ;;  %v1279_v16 = vsub.f32 %v2510_v24, %v1278_v49 }
  0xae   :  { %1094 = vmatpush.msra.mxu0 %v2745_v17  ;;  %1168 = vmatpush.msra.mxu2 %v2427_v9 }
  0xaf   :  { %1127 = vmatpush.msra.mxu1 %v2192_v13  ;;  %1251 = vmatpush.msra.mxu3 %v1250_v41  ;;  %v2747_v13 = vand.u32 4294901760, %v2311_v33  ;;  %v1274_v32 = vand.u32 4294901760, %v1273_v25  ;;  %v1280_v33 = vand.u32 4294901760, %v1279_v16 }
  0xb0   :  { %1098 = vmatpush.msra.mxu0 %v2746_v43  ;;  %1170 = vmatpush.msra.mxu2 %v2440_v18 }
  0xb1   :  { %1129 = vmatpush.msra.mxu1 %v2205_v42  ;;  %1257 = vmatpush.msra.mxu3 %v1256_v14  ;;  %v1181_v42 = vand.u32 4294901760, %v1180_v46 }
  0xb2   :  { %1102 = vmatpush.msra.mxu0 %v2747_v13  ;;  %1172 = vmatpush.msra.mxu2 %v2457_v6 }
  0xb3   :  { %1131 = vmatpush.msra.mxu1 %v2217_v63  ;;  %1263 = vmatpush.msra.mxu3 %v1262_v11  ;;  %v2748_v63 = vand.u32 4294901760, %v2304_v59 }
  0xb4   :  { %1104 = vmatmul.f32.vlgmr.msra.gmra.mxu0 %v2225_v7  ;;  %1174 = vmatpush.msra.mxu2 %v2470_v10 }
  0xb5   :  { %1289 = vmatpush.msrb.mxu0 %v2304_v59  ;;  %1133 = vmatpush.msra.mxu1 %v2231_v40  ;;  %v2749_v40 = vand.u32 4294901760, %v2325_v12  ;;  %v2751_v59 = vand.u32 4294901760, %v2335_v31 }
  0xb6   :  { %1269 = vmatpush.msra.mxu3 %v1268_v56  ;;  %1176 = vmatpush.msra.mxu2 %v2485_v39 }
  0xb7   :  { %1292 = vmatpush.msrb.mxu0 %v2325_v12  ;;  %1135 = vmatpush.msra.mxu1 %v2243_v38  ;;  %v2750_v38 = vld [vmem:[#allocation12_spill] sm:$0xff]  ;;  %v2755_v12 = vand.u32 4294901760, %v2387_v54 }
  0xb8   :  { %1275 = vmatpush.msra.mxu3 %v1274_v32  ;;  %1182 = vmatmul.f32.vlgmr.msra.gmra.mxu2 %v1181_v42 }
  0xb9   :  { %1295 = vmatpush.msrb.mxu0 %v2335_v31  ;;  %1383 = vmatpush.msrb.mxu2 %v2748_v63  ;;  %v2757_v31 = vand.u32 4294901760, %v2413_v61 }
  0xba   :  { %1137 = vmatpush.msra.mxu1 %v2264_v23  ;;  %1281 = vmatpush.msra.mxu3 %v1280_v33  ;;  %v2752_v23 = vand.u32 4294901760, %v2343_v27 }
  0xbb   :  { %1283 = vmatmul.f32.vlgmr.msra.gmra.mxu3 %v2472_v37  ;;  %1298 = vmatpush.msrb.mxu0 %v2343_v27 }
  0xbc   :  { %1387 = vmatpush.msrb.mxu2 %v2749_v40  ;;  %1450 = vmatpush.msrb.mxu3 %v2277_v48 }
  0xbd   :  { %1139 = vmatpush.msra.mxu1 %v2750_v38  ;;  %1301 = vmatpush.msrb.mxu0 %v2354_v58 }
  0xbe   :  { %1141 = vmatmul.f32.vlgmr.msra.gmra.mxu1 %v2225_v7  ;;  %1391 = vmatpush.msrb.mxu2 %v2751_v59  ;;  %v2753_v7 = vand.u32 4294901760, %v2354_v58 }
  0xbf   :  { %1342 = vmatpush.msrb.mxu1 %v2277_v48  ;;  %1452 = vmatpush.msrb.mxu3 %v2296_v47  ;;  %v2754_v48 = vand.u32 4294901760, %v2373_v2 }
  0xc0   :  { %1304 = vmatpush.msrb.mxu0 %v2373_v2  ;;  %1395 = vmatpush.msrb.mxu2 %v2752_v23 }
  0xc1   :  { %1344 = vmatpush.msrb.mxu1 %v2296_v47  ;;  %1454 = vmatpush.msrb.mxu3 %v2313_v15 }
  0xc2   :  { %1307 = vmatpush.msrb.mxu0 %v2387_v54  ;;  %1399 = vmatpush.msrb.mxu2 %v2753_v7 }
  0xc3   :  { %1346 = vmatpush.msrb.mxu1 %v2313_v15  ;;  %1456 = vmatpush.msrb.mxu3 %v2318_v52  ;;  %v2756_v15 = vand.u32 4294901760, %v2401_v0 }
  0xc4   :  { %1310 = vmatpush.msrb.mxu0 %v2401_v0  ;;  %1403 = vmatpush.msrb.mxu2 %v2754_v48  ;;  %v112_v0 = vstv %s2649_s2  ;;  %s1592_s2 = smov [#allocation8]  }
  0xc5   :  { %1348 = vmatpush.msrb.mxu1 %v2318_v52  ;;  %1458 = vmatpush.msrb.mxu3 %v2330_v51  ;;  %s1492_s24 = sshll.u32 %s1592_s2, 4  ;;  %s1493_s24 = int_to_ptr.vmem [resolvable:$true] %s1492_s24 }
  0xc6   :  { %1313 = vmatpush.msrb.mxu0 %v2413_v61  ;;  %1407 = vmatpush.msrb.mxu2 %v2755_v12 }
  0xc7   :  { %1350 = vmatpush.msrb.mxu1 %v2330_v51  ;;  %1460 = vmatpush.msrb.mxu3 %v2347_v19  ;;  %v160_v51 = vpop.f32.mrf.mxu0 }
  0xc8   :  { %1316 = vmatpush.msrb.mxu0 %v2425_v26  ;;  %1411 = vmatpush.msrb.mxu2 %v2756_v15  ;;  %v161_v47 = vadd.f32 %v160_v51, %v112_v0 }
  0xc9   :  { %1352 = vmatpush.msrb.mxu1 %v2347_v19  ;;  %1462 = vmatpush.msrb.mxu3 %v2362_v45 }
  0xca   :  { %1319 = vmatpush.msrb.mxu0 %v2438_v28  ;;  %1415 = vmatpush.msrb.mxu2 %v2757_v31 }
  0xcb   :  { %1354 = vmatpush.msrb.mxu1 %v2362_v45  ;;  %1464 = vmatpush.msrb.mxu3 %v2375_v57 }
  0xcc   :  { %1322 = vmatpush.msrb.mxu0 %v2452_v50  ;;  %1419 = vmatpush.msrb.mxu2 %v1242_v5 }
  0xcd   :  { %1356 = vmatpush.msrb.mxu1 %v2375_v57  ;;  %1466 = vmatpush.msrb.mxu3 %v2389_v20 }
  0xce   :  { %1325 = vmatpush.msrb.mxu0 %v2465_v21  ;;  %1423 = vmatpush.msrb.mxu2 %v1248_v22 }
  0xcf   :  { %1358 = vmatpush.msrb.mxu1 %v2389_v20  ;;  %1468 = vmatpush.msrb.mxu3 %v2403_v4 }
  0xd0   :  { %1328 = vmatpush.msrb.mxu0 %v2483_v35  ;;  %1427 = vmatpush.msrb.mxu2 %v1254_v1 }
  0xd1   :  { %1360 = vmatpush.msrb.mxu1 %v2403_v4  ;;  %1470 = vmatpush.msrb.mxu3 %v2415_v44 }
  0xd2   :  { %1331 = vmatpush.msrb.mxu0 %v2496_v30  ;;  %1431 = vmatpush.msrb.mxu2 %v1260_v29 }
  0xd3   :  { %1362 = vmatpush.msrb.mxu1 %v2415_v44  ;;  %1472 = vmatpush.msrb.mxu3 %v2427_v9  ;;  %v261_v58 = vpop.f32.mrf.mxu1 }
  0xd4   :  { %1334 = vmatpush.msrb.mxu0 %v2510_v24  ;;  %1435 = vmatpush.msrb.mxu2 %v1266_v8  ;;  %v262_v52 = vadd.f32 %v261_v58, %v161_v47  ;;  %v315_v27 = vpop.f32.mrf.mxu2  ;;  %v354_v45 = vpop.f32.mrf.mxu3 }
  0xd5   :  { %1364 = vmatpush.msrb.mxu1 %v2427_v9  ;;  %1474 = vmatpush.msrb.mxu3 %v2440_v18 }
  0xd6   :  { %1337 = vmatmul.f32.vlgmr.msrb.gmra.mxu0 %v2499_v34  ;;  %1439 = vmatpush.msrb.mxu2 %v1272_v55  ;;  %v316_v19 = vadd.f32 %v315_v27, %v262_v52 }
  0xd7   :  { %1366 = vmatpush.msrb.mxu1 %v2440_v18  ;;  %1476 = vmatpush.msrb.mxu3 %v2457_v6 }
  0xd8   :  { %1443 = vmatpush.msrb.mxu2 %v1278_v49  ;;  %v355_v2 = vadd.f32 %v354_v45, %v316_v19 }
  0xd9   :  { %1368 = vmatpush.msrb.mxu1 %v2457_v6  ;;  %1478 = vmatpush.msrb.mxu3 %v2470_v10  ;;  %v423_v57 = vpop.f32.mrf.mxu0 }
  0xda   :  { %1445 = vmatmul.f32.vlgmr.msrb.gmra.mxu2 %v2472_v37  ;;  %v424_v54 = vadd.f32 %v423_v57, %v355_v2 }
  0xdb   :  { %1370 = vmatpush.msrb.mxu1 %v2470_v10  ;;  %1480 = vmatpush.msrb.mxu3 %v2485_v39 }
  0xdc   :  { %1482 = vmatmul.f32.vlgmr.msrb.gmra.mxu3 %v2472_v37  ;;  %v460_v20 = vpop.f32.mrf.mxu1 }
  0xdd   :  { %1372 = vmatpush.msrb.mxu1 %v2485_v39  ;;  %v461_v4 = vadd.f32 %v460_v20, %v424_v54  ;;  %v501_v50 = vpop.f32.mrf.mxu2 }
  0xde   :  { %1376 = vmatmul.f32.vlgmr.msrb.gmra.mxu1 %v1179_v53 }
  0xdf   :  { %v502_v61 = vadd.f32 %v501_v50, %v461_v4 }
  0xe0   :  { %v602_v44 = vpop.f32.mrf.mxu3 }
  0xe1   :  { %v603_v9 = vadd.f32 %v602_v44, %v502_v61 }
  0xed   :  { %v656_v26 = vpop.f32.mrf.mxu0 }
  0xee   :  { %v657_v18 = vadd.f32 %v656_v26, %v603_v9 }
  0xf7   :  { %v695_v28 = vpop.f32.mrf.mxu1  ;;  %v764_v6 = vpop.f32.mrf.mxu2 }
  0xf8   :  { %v696_v5 = vadd.f32 %v695_v28, %v657_v18 }
  0xfa   :  { %v765_v22 = vadd.f32 %v764_v6, %v696_v5  ;;  %v801_v21 = vpop.f32.mrf.mxu3 }
  0xfc   :  { %v802_v37 = vadd.f32 %v801_v21, %v765_v22 }
 0x10f   :  { %v842_v10 = vpop.f32.mrf.mxu0 }
 0x110   :  { %v843_v35 = vadd.f32 %v842_v10, %v802_v37 }
 0x119   :  { %v943_v1 = vpop.f32.mrf.mxu1  ;;  %v997_v29 = vpop.f32.mrf.mxu2 }
 0x11a   :  { %v944_v39 = vadd.f32 %v943_v1, %v843_v35 }
 0x11c   :  { %v998_v30 = vadd.f32 %v997_v29, %v944_v39  ;;  %v1036_v34 = vpop.f32.mrf.mxu3 }
 0x11e   :  { %v1037_v8 = vadd.f32 %v1036_v34, %v998_v30 }
 0x131   :  { %v1105_v60 = vpop.f32.mrf.mxu0 }
 0x132   :  { %v1106_v41 = vadd.f32 %v1105_v60, %v1037_v8 }
 0x13b   :  { %v1142_v24 = vpop.f32.mrf.mxu1  ;;  %v1183_v36 = vpop.f32.mrf.mxu2 }
 0x13c   :  { %v1143_v62 = vadd.f32 %v1142_v24, %v1106_v41 }
 0x13e   :  { %v1184_v55 = vadd.f32 %v1183_v36, %v1143_v62  ;;  %v1284_v53 = vpop.f32.mrf.mxu3 }
 0x140   :  { %v1285_v17 = vadd.f32 %v1284_v53, %v1184_v55 }
 0x153   :  { %v1338_v14 = vpop.f32.mrf.mxu0 }
 0x154   :  { %v1339_v3 = vadd.f32 %v1338_v14, %v1285_v17 }
 0x15b   :  { %v1377_v49 = vpop.f32.mrf.mxu1 }
 0x15c   :  { %v1378_v11 = vadd.f32 %v1377_v49, %v1339_v3 }
 0x15d   :  { %v1446_v43 = vpop.f32.mrf.mxu2 }
 0x15e   :  { %v1447_v25 = vadd.f32 %v1446_v43, %v1378_v11 }
 0x15f   :  { %v1483_v46 = vpop.f32.mrf.mxu3 }
 0x160   :  { %v1484_v13 = vadd.f32 %v1483_v46, %v1447_v25 }
 0x162   :  { %1486 = vst [vmem:[#allocation8] sm:$0x1] %v1484_v13 }
 0x163   :  { %1497 = dma.vmem_to_hbm [thread:$0]  %s1493_s24, 16, %s1495_s27, [#allocation5]  }
 0x164   :  { %1586 = dma.done.wait [#allocation5], 16  }
 0x165   :  { %1587 = vsyncadd [#allocation5], 4294967280 }
 0x166   :  { %1502 = vsyncpa [#allocation4], 1 }
 0x167   :  { %1503 = vsyncpa [#allocation7], 1 }
 0x168   :  { %1504 = vsyncpa [#allocation5], 1 }

</bundles_post_ra>
